<compile_context>
chip_gen: v7x
topology: tpu7x:2x2x1
jax: 0.10.0
libtpu: 0.0.40
codegen_flags: <defaults>
</compile_context>

<pallas_src>
from functools import partial

import jax
import jax.numpy as jnp
from jax.experimental import pallas as pl
from jax.experimental.pallas import tpu as pltpu

D_PAD = 128   # padded hidden/feature width (lane dimension)
C_PAD = 128   # padded class width (lane dimension)
B_PAD = 8     # minimum padded batch (sublane dimension)


def rnn_classify_kernel(ids_ref, proj_ref, whh_ref, wcls_ref, bcls_ref, out_ref):
    """Fused embedding gather + Elman RNN recurrence + linear head.

    ids_ref  : SMEM (B, S)     int32  token ids (scalar-prefetch operand)
    proj_ref : VMEM (V, 1, Dp) f32    pre-projected rows: emb @ W_ih^T + b_ih + b_hh
    whh_ref  : VMEM (Dp, Dp)   bf16   W_hh^T, zero-padded to lane width
    wcls_ref : VMEM (Dp, Cp)   bf16   classifier weight^T, zero-padded
    bcls_ref : VMEM (1, Cp)    f32    classifier bias, zero-padded
    out_ref  : VMEM (Bp, Cp)   f32    padded logits (argmax + slice done outside)
    """
    B, S = ids_ref.shape
    Bp, Cp = out_ref.shape
    Dp = proj_ref.shape[-1]

    whh = whh_ref[...]                                   # (Dp, Dp) bf16, loaded once

    pad_rows = ()
    if Bp > B:
        pad_rows = (jnp.zeros((Bp - B, Dp), jnp.float32),)

    def load_step(t):
        # Dynamic leading-axis row gather from the VMEM table, driven by SMEM
        # scalars; assemble one dense (Bp, Dp) = (8, 128) vreg per time step.
        rows = tuple(proj_ref[ids_ref[b, t]] for b in range(B))   # each (1, Dp) f32
        return jnp.concatenate(rows + pad_rows, axis=0)

    # h_0 = 0 and the biases are already folded into the projected table, so the
    # first step needs no matmul on the serial chain: h_1 = tanh(xp_0).
    h = jnp.tanh(load_step(0))

    # Remaining steps: one bf16 MXU matmul + f32 add/tanh per step.
    # S is small & static -> Python unroll (use lax.fori_loop(unroll=k) if S grows).
    for t in range(1, S):
        h = jnp.tanh(
            load_step(t)
            + jnp.dot(h.astype(jnp.bfloat16), whh, preferred_element_type=jnp.float32)
        )

    # TODO(synk): W_hh could be held weight-stationary in the MXU via
    # pltpu.matmul_push_rhs / matmul_acc_lhs / matmul_pop to avoid re-streaming
    # the RHS each step; kept as plain jnp.dot for robustness.
    logits = (
        jnp.dot(h.astype(jnp.bfloat16), wcls_ref[...], preferred_element_type=jnp.float32)
        + bcls_ref[...]
    )
    out_ref[...] = logits


@partial(jax.jit, static_argnames=("num_classes",))
def torch_model_forward(x_ids, proj_table, whh_t, wcls_t, bcls_p, *, num_classes):
    """Inference path of TorchModel.forward (y=None) -> argmax class ids, shape (B,)."""
    x_ids = x_ids.astype(jnp.int32)
    B = x_ids.shape[0]
    b_pad = max(B_PAD, ((B + 7) // 8) * 8)

    logits_p = pl.pallas_call(
        rnn_classify_kernel,
        out_shape=jax.ShapeDtypeStruct((b_pad, C_PAD), jnp.float32),
        grid_spec=pltpu.PrefetchScalarGridSpec(
            num_scalar_prefetch=1,          # x_ids -> SMEM, fused in-kernel gather
            grid=(1,),
            in_specs=[
                pl.BlockSpec(proj_table.shape, lambda i, ids: (0, 0, 0)),
                pl.BlockSpec(whh_t.shape, lambda i, ids: (0, 0)),
                pl.BlockSpec(wcls_t.shape, lambda i, ids: (0, 0)),
                pl.BlockSpec(bcls_p.shape, lambda i, ids: (0, 0)),
            ],
            out_specs=pl.BlockSpec((b_pad, C_PAD), lambda i, ids: (0, 0)),
        ),
        compiler_params=pltpu.CompilerParams(
            dimension_semantics=("arbitrary",),
        ),
    )(x_ids, proj_table, whh_t, wcls_t, bcls_p)

    # argmax over the real classes (torch.argmax(y_pred, dim=1)); int32 vs torch int64.
    return jnp.argmax(logits_p[:B, :num_classes], axis=1)


def init_params(key, vocab_size, vector_dim, sentence_length):
    """Deterministic synthetic parameters matching the nn.Module shapes."""
    ks = jax.random.split(key, 7)
    num_classes = sentence_length + 1

    embedding = 0.1 * jax.random.normal(ks[0], (vocab_size, vector_dim), jnp.float32)
    embedding = embedding.at[0].set(0.0)  # padding_idx=0

    params = {
        "embedding": embedding,
        "w_ih": 0.1 * jax.random.normal(ks[1], (vector_dim, vector_dim), jnp.float32),
        "w_hh": 0.1 * jax.random.normal(ks[2], (vector_dim, vector_dim), jnp.float32),
        "b_ih": 0.1 * jax.random.normal(ks[3], (vector_dim,), jnp.float32),
        "b_hh": 0.1 * jax.random.normal(ks[4], (vector_dim,), jnp.float32),
        "w_cls": 0.1 * jax.random.normal(ks[5], (num_classes, vector_dim), jnp.float32),
        "b_cls": 0.1 * jax.random.normal(ks[6], (num_classes,), jnp.float32),
    }
    return params


def prepare_params(params):
    """One-time prep: fold embedding+input projection+biases, transpose, pad, cast."""
    emb = params["embedding"]                  # (V, D) f32
    V, D = emb.shape
    C = params["w_cls"].shape[0]

    # xp[v] = emb[v] @ W_ih^T + b_ih + b_hh, precomputed per vocab row.
    proj = emb @ params["w_ih"].T + params["b_ih"] + params["b_hh"]     # (V, D)
    # (V, 1, Dp) layout: in-kernel gather indexes the leading (untiled) axis;
    # padded lanes are zero so h's padded columns stay exactly 0 through tanh.
    proj_table = jnp.zeros((V, 1, D_PAD), jnp.float32).at[:, 0, :D].set(proj)

    # Recurrent / classifier weights: transpose, zero-pad to lane width, cast to
    # bf16 for single-pass MXU matmuls; bias and activations stay f32.
    whh_t = jnp.zeros((D_PAD, D_PAD), jnp.bfloat16).at[:D, :D].set(
        params["w_hh"].T.astype(jnp.bfloat16))
    wcls_t = jnp.zeros((D_PAD, C_PAD), jnp.bfloat16).at[:D, :C].set(
        params["w_cls"].T.astype(jnp.bfloat16))
    bcls_p = jnp.zeros((1, C_PAD), jnp.float32).at[0, :C].set(params["b_cls"])

    return proj_table, whh_t, wcls_t, bcls_p, C


if __name__ == "__main__":
    vector_dim = 32
    sentence_length = 8
    vocab_size = 30
    batch = 2

    key = jax.random.PRNGKey(0)
    k_param, k_data = jax.random.split(key)

    params = init_params(k_param, vocab_size, vector_dim, sentence_length)
    proj_table, whh_t, wcls_t, bcls_p, num_classes = prepare_params(params)
    # Materialize the one-time prep so it is not recomputed per call.
    proj_table, whh_t, wcls_t, bcls_p = jax.block_until_ready(
        (proj_table, whh_t, wcls_t, bcls_p)
    )

    x_ids = jax.random.randint(
        k_data, (batch, sentence_length), 0, vocab_size, dtype=jnp.int32
    )

    # TODO(synk): CrossEntropyLoss training branch (y is not None) is not implemented;
    # only the inference path (argmax of logits) is reproduced here.
    pred = torch_model_forward(
        x_ids, proj_table, whh_t, wcls_t, bcls_p, num_classes=num_classes
    )
    jax.block_until_ready(pred)
    print("KERNEL_OK")
</pallas_src>

<mosaic_0001>
module attributes {stable_mosaic.version = 11 : i64} {
  func.func @rnn_classify_kernel(%arg0: i32, %arg1: memref<2x8xi32, #tpu.memory_space<smem>>, %arg2: memref<30x1x128xf32, #tpu.memory_space<vmem>>, %arg3: memref<128x128xbf16, #tpu.memory_space<vmem>>, %arg4: memref<128x128xbf16, #tpu.memory_space<vmem>>, %arg5: memref<1x128xf32, #tpu.memory_space<vmem>>, %arg6: memref<8x128xf32, #tpu.memory_space<vmem>>) attributes {dimension_semantics = [#tpu.dimension_semantics<arbitrary>], iteration_bounds = array<i64: 1>, scalar_prefetch = 1 : i64, scratch_operands = 0 : i64, tpu.core_type = #tpu.core_type<tc>, window_params = [{pipeline_mode = #tpu.pipeline_mode<synchronous>, transform_indices = @transform_0, window_bounds = array<i64: 30, 1, 128>}, {pipeline_mode = #tpu.pipeline_mode<synchronous>, transform_indices = @transform_1, window_bounds = array<i64: 128, 128>}, {pipeline_mode = #tpu.pipeline_mode<synchronous>, transform_indices = @transform_2, window_bounds = array<i64: 128, 128>}, {pipeline_mode = #tpu.pipeline_mode<synchronous>, transform_indices = @transform_3, window_bounds = array<i64: 1, 128>}, {pipeline_mode = #tpu.pipeline_mode<synchronous>, transform_indices = @transform_4, window_bounds = array<i64: 8, 128>}]} {
    %c0 = arith.constant 0 : index
    %c0_0 = arith.constant 0 : index
    %0 = vector.load %arg3[%c0, %c0_0] : memref<128x128xbf16, #tpu.memory_space<vmem>>, vector<128x128xbf16>
    %cst = arith.constant 0.000000e+00 : f32
    %1 = vector.broadcast %cst : f32 to vector<6x128xf32>
    %c0_1 = arith.constant 0 : index
    %c0_2 = arith.constant 0 : index
    %2 = memref.load %arg1[%c0_1, %c0_2] : memref<2x8xi32, #tpu.memory_space<smem>>
    %3 = arith.index_cast %2 : i32 to index
    %c0_3 = arith.constant 0 : index
    %c0_4 = arith.constant 0 : index
    %4 = vector.load %arg2[%3, %c0_3, %c0_4] : memref<30x1x128xf32, #tpu.memory_space<vmem>>, vector<1x1x128xf32>
    %5 = vector.shape_cast %4 : vector<1x1x128xf32> to vector<1x128xf32>
    %c1 = arith.constant 1 : index
    %c0_5 = arith.constant 0 : index
    %6 = memref.load %arg1[%c1, %c0_5] : memref<2x8xi32, #tpu.memory_space<smem>>
    %7 = arith.index_cast %6 : i32 to index
    %c0_6 = arith.constant 0 : index
    %c0_7 = arith.constant 0 : index
    %8 = vector.load %arg2[%7, %c0_6, %c0_7] : memref<30x1x128xf32, #tpu.memory_space<vmem>>, vector<1x1x128xf32>
    %9 = vector.shape_cast %8 : vector<1x1x128xf32> to vector<1x128xf32>
    %10 = tpu.concatenate %5, %9, %1 in 0 : vector<1x128xf32>, vector<1x128xf32>, vector<6x128xf32> -> vector<8x128xf32>
    %11 = math.tanh %10 : vector<8x128xf32>
    %c0_8 = arith.constant 0 : index
    %c1_9 = arith.constant 1 : index
    %12 = memref.load %arg1[%c0_8, %c1_9] : memref<2x8xi32, #tpu.memory_space<smem>>
    %13 = arith.index_cast %12 : i32 to index
    %c0_10 = arith.constant 0 : index
    %c0_11 = arith.constant 0 : index
    %14 = vector.load %arg2[%13, %c0_10, %c0_11] : memref<30x1x128xf32, #tpu.memory_space<vmem>>, vector<1x1x128xf32>
    %15 = vector.shape_cast %14 : vector<1x1x128xf32> to vector<1x128xf32>
    %c1_12 = arith.constant 1 : index
    %c1_13 = arith.constant 1 : index
    %16 = memref.load %arg1[%c1_12, %c1_13] : memref<2x8xi32, #tpu.memory_space<smem>>
    %17 = arith.index_cast %16 : i32 to index
    %c0_14 = arith.constant 0 : index
    %c0_15 = arith.constant 0 : index
    %18 = vector.load %arg2[%17, %c0_14, %c0_15] : memref<30x1x128xf32, #tpu.memory_space<vmem>>, vector<1x1x128xf32>
    %19 = vector.shape_cast %18 : vector<1x1x128xf32> to vector<1x128xf32>
    %20 = tpu.concatenate %15, %19, %1 in 0 : vector<1x128xf32>, vector<1x128xf32>, vector<6x128xf32> -> vector<8x128xf32>
    %21 = arith.truncf %11 : vector<8x128xf32> to vector<8x128xbf16>
    %cst_16 = arith.constant dense<0.000000e+00> : vector<8x128xf32>
    %22 = tpu.matmul %21, %0, %cst_16 {dimension_numbers = #tpu.dot_dimension_numbers<[1], [0], [0], [1], [0, 0, 1, 1], [], []>} : vector<8x128xbf16>, vector<128x128xbf16>, vector<8x128xf32> -> vector<8x128xf32>
    %23 = arith.addf %20, %22 : vector<8x128xf32>
    %24 = math.tanh %23 : vector<8x128xf32>
    %c0_17 = arith.constant 0 : index
    %c2 = arith.constant 2 : index
    %25 = memref.load %arg1[%c0_17, %c2] : memref<2x8xi32, #tpu.memory_space<smem>>
    %26 = arith.index_cast %25 : i32 to index
    %c0_18 = arith.constant 0 : index
    %c0_19 = arith.constant 0 : index
    %27 = vector.load %arg2[%26, %c0_18, %c0_19] : memref<30x1x128xf32, #tpu.memory_space<vmem>>, vector<1x1x128xf32>
    %28 = vector.shape_cast %27 : vector<1x1x128xf32> to vector<1x128xf32>
    %c1_20 = arith.constant 1 : index
    %c2_21 = arith.constant 2 : index
    %29 = memref.load %arg1[%c1_20, %c2_21] : memref<2x8xi32, #tpu.memory_space<smem>>
    %30 = arith.index_cast %29 : i32 to index
    %c0_22 = arith.constant 0 : index
    %c0_23 = arith.constant 0 : index
    %31 = vector.load %arg2[%30, %c0_22, %c0_23] : memref<30x1x128xf32, #tpu.memory_space<vmem>>, vector<1x1x128xf32>
    %32 = vector.shape_cast %31 : vector<1x1x128xf32> to vector<1x128xf32>
    %33 = tpu.concatenate %28, %32, %1 in 0 : vector<1x128xf32>, vector<1x128xf32>, vector<6x128xf32> -> vector<8x128xf32>
    %34 = arith.truncf %24 : vector<8x128xf32> to vector<8x128xbf16>
    %cst_24 = arith.constant dense<0.000000e+00> : vector<8x128xf32>
    %35 = tpu.matmul %34, %0, %cst_24 {dimension_numbers = #tpu.dot_dimension_numbers<[1], [0], [0], [1], [0, 0, 1, 1], [], []>} : vector<8x128xbf16>, vector<128x128xbf16>, vector<8x128xf32> -> vector<8x128xf32>
    %36 = arith.addf %33, %35 : vector<8x128xf32>
    %37 = math.tanh %36 : vector<8x128xf32>
    %c0_25 = arith.constant 0 : index
    %c3 = arith.constant 3 : index
    %38 = memref.load %arg1[%c0_25, %c3] : memref<2x8xi32, #tpu.memory_space<smem>>
    %39 = arith.index_cast %38 : i32 to index
    %c0_26 = arith.constant 0 : index
    %c0_27 = arith.constant 0 : index
    %40 = vector.load %arg2[%39, %c0_26, %c0_27] : memref<30x1x128xf32, #tpu.memory_space<vmem>>, vector<1x1x128xf32>
    %41 = vector.shape_cast %40 : vector<1x1x128xf32> to vector<1x128xf32>
    %c1_28 = arith.constant 1 : index
    %c3_29 = arith.constant 3 : index
    %42 = memref.load %arg1[%c1_28, %c3_29] : memref<2x8xi32, #tpu.memory_space<smem>>
    %43 = arith.index_cast %42 : i32 to index
    %c0_30 = arith.constant 0 : index
    %c0_31 = arith.constant 0 : index
    %44 = vector.load %arg2[%43, %c0_30, %c0_31] : memref<30x1x128xf32, #tpu.memory_space<vmem>>, vector<1x1x128xf32>
    %45 = vector.shape_cast %44 : vector<1x1x128xf32> to vector<1x128xf32>
    %46 = tpu.concatenate %41, %45, %1 in 0 : vector<1x128xf32>, vector<1x128xf32>, vector<6x128xf32> -> vector<8x128xf32>
    %47 = arith.truncf %37 : vector<8x128xf32> to vector<8x128xbf16>
    %cst_32 = arith.constant dense<0.000000e+00> : vector<8x128xf32>
    %48 = tpu.matmul %47, %0, %cst_32 {dimension_numbers = #tpu.dot_dimension_numbers<[1], [0], [0], [1], [0, 0, 1, 1], [], []>} : vector<8x128xbf16>, vector<128x128xbf16>, vector<8x128xf32> -> vector<8x128xf32>
    %49 = arith.addf %46, %48 : vector<8x128xf32>
    %50 = math.tanh %49 : vector<8x128xf32>
    %c0_33 = arith.constant 0 : index
    %c4 = arith.constant 4 : index
    %51 = memref.load %arg1[%c0_33, %c4] : memref<2x8xi32, #tpu.memory_space<smem>>
    %52 = arith.index_cast %51 : i32 to index
    %c0_34 = arith.constant 0 : index
    %c0_35 = arith.constant 0 : index
    %53 = vector.load %arg2[%52, %c0_34, %c0_35] : memref<30x1x128xf32, #tpu.memory_space<vmem>>, vector<1x1x128xf32>
    %54 = vector.shape_cast %53 : vector<1x1x128xf32> to vector<1x128xf32>
    %c1_36 = arith.constant 1 : index
    %c4_37 = arith.constant 4 : index
    %55 = memref.load %arg1[%c1_36, %c4_37] : memref<2x8xi32, #tpu.memory_space<smem>>
    %56 = arith.index_cast %55 : i32 to index
    %c0_38 = arith.constant 0 : index
    %c0_39 = arith.constant 0 : index
    %57 = vector.load %arg2[%56, %c0_38, %c0_39] : memref<30x1x128xf32, #tpu.memory_space<vmem>>, vector<1x1x128xf32>
    %58 = vector.shape_cast %57 : vector<1x1x128xf32> to vector<1x128xf32>
    %59 = tpu.concatenate %54, %58, %1 in 0 : vector<1x128xf32>, vector<1x128xf32>, vector<6x128xf32> -> vector<8x128xf32>
    %60 = arith.truncf %50 : vector<8x128xf32> to vector<8x128xbf16>
    %cst_40 = arith.constant dense<0.000000e+00> : vector<8x128xf32>
    %61 = tpu.matmul %60, %0, %cst_40 {dimension_numbers = #tpu.dot_dimension_numbers<[1], [0], [0], [1], [0, 0, 1, 1], [], []>} : vector<8x128xbf16>, vector<128x128xbf16>, vector<8x128xf32> -> vector<8x128xf32>
    %62 = arith.addf %59, %61 : vector<8x128xf32>
    %63 = math.tanh %62 : vector<8x128xf32>
    %c0_41 = arith.constant 0 : index
    %c5 = arith.constant 5 : index
    %64 = memref.load %arg1[%c0_41, %c5] : memref<2x8xi32, #tpu.memory_space<smem>>
    %65 = arith.index_cast %64 : i32 to index
    %c0_42 = arith.constant 0 : index
    %c0_43 = arith.constant 0 : index
    %66 = vector.load %arg2[%65, %c0_42, %c0_43] : memref<30x1x128xf32, #tpu.memory_space<vmem>>, vector<1x1x128xf32>
    %67 = vector.shape_cast %66 : vector<1x1x128xf32> to vector<1x128xf32>
    %c1_44 = arith.constant 1 : index
    %c5_45 = arith.constant 5 : index
    %68 = memref.load %arg1[%c1_44, %c5_45] : memref<2x8xi32, #tpu.memory_space<smem>>
    %69 = arith.index_cast %68 : i32 to index
    %c0_46 = arith.constant 0 : index
    %c0_47 = arith.constant 0 : index
    %70 = vector.load %arg2[%69, %c0_46, %c0_47] : memref<30x1x128xf32, #tpu.memory_space<vmem>>, vector<1x1x128xf32>
    %71 = vector.shape_cast %70 : vector<1x1x128xf32> to vector<1x128xf32>
    %72 = tpu.concatenate %67, %71, %1 in 0 : vector<1x128xf32>, vector<1x128xf32>, vector<6x128xf32> -> vector<8x128xf32>
    %73 = arith.truncf %63 : vector<8x128xf32> to vector<8x128xbf16>
    %cst_48 = arith.constant dense<0.000000e+00> : vector<8x128xf32>
    %74 = tpu.matmul %73, %0, %cst_48 {dimension_numbers = #tpu.dot_dimension_numbers<[1], [0], [0], [1], [0, 0, 1, 1], [], []>} : vector<8x128xbf16>, vector<128x128xbf16>, vector<8x128xf32> -> vector<8x128xf32>
    %75 = arith.addf %72, %74 : vector<8x128xf32>
    %76 = math.tanh %75 : vector<8x128xf32>
    %c0_49 = arith.constant 0 : index
    %c6 = arith.constant 6 : index
    %77 = memref.load %arg1[%c0_49, %c6] : memref<2x8xi32, #tpu.memory_space<smem>>
    %78 = arith.index_cast %77 : i32 to index
    %c0_50 = arith.constant 0 : index
    %c0_51 = arith.constant 0 : index
    %79 = vector.load %arg2[%78, %c0_50, %c0_51] : memref<30x1x128xf32, #tpu.memory_space<vmem>>, vector<1x1x128xf32>
    %80 = vector.shape_cast %79 : vector<1x1x128xf32> to vector<1x128xf32>
    %c1_52 = arith.constant 1 : index
    %c6_53 = arith.constant 6 : index
    %81 = memref.load %arg1[%c1_52, %c6_53] : memref<2x8xi32, #tpu.memory_space<smem>>
    %82 = arith.index_cast %81 : i32 to index
    %c0_54 = arith.constant 0 : index
    %c0_55 = arith.constant 0 : index
    %83 = vector.load %arg2[%82, %c0_54, %c0_55] : memref<30x1x128xf32, #tpu.memory_space<vmem>>, vector<1x1x128xf32>
    %84 = vector.shape_cast %83 : vector<1x1x128xf32> to vector<1x128xf32>
    %85 = tpu.concatenate %80, %84, %1 in 0 : vector<1x128xf32>, vector<1x128xf32>, vector<6x128xf32> -> vector<8x128xf32>
    %86 = arith.truncf %76 : vector<8x128xf32> to vector<8x128xbf16>
    %cst_56 = arith.constant dense<0.000000e+00> : vector<8x128xf32>
    %87 = tpu.matmul %86, %0, %cst_56 {dimension_numbers = #tpu.dot_dimension_numbers<[1], [0], [0], [1], [0, 0, 1, 1], [], []>} : vector<8x128xbf16>, vector<128x128xbf16>, vector<8x128xf32> -> vector<8x128xf32>
    %88 = arith.addf %85, %87 : vector<8x128xf32>
    %89 = math.tanh %88 : vector<8x128xf32>
    %c0_57 = arith.constant 0 : index
    %c7 = arith.constant 7 : index
    %90 = memref.load %arg1[%c0_57, %c7] : memref<2x8xi32, #tpu.memory_space<smem>>
    %91 = arith.index_cast %90 : i32 to index
    %c0_58 = arith.constant 0 : index
    %c0_59 = arith.constant 0 : index
    %92 = vector.load %arg2[%91, %c0_58, %c0_59] : memref<30x1x128xf32, #tpu.memory_space<vmem>>, vector<1x1x128xf32>
    %93 = vector.shape_cast %92 : vector<1x1x128xf32> to vector<1x128xf32>
    %c1_60 = arith.constant 1 : index
    %c7_61 = arith.constant 7 : index
    %94 = memref.load %arg1[%c1_60, %c7_61] : memref<2x8xi32, #tpu.memory_space<smem>>
    %95 = arith.index_cast %94 : i32 to index
    %c0_62 = arith.constant 0 : index
    %c0_63 = arith.constant 0 : index
    %96 = vector.load %arg2[%95, %c0_62, %c0_63] : memref<30x1x128xf32, #tpu.memory_space<vmem>>, vector<1x1x128xf32>
    %97 = vector.shape_cast %96 : vector<1x1x128xf32> to vector<1x128xf32>
    %98 = tpu.concatenate %93, %97, %1 in 0 : vector<1x128xf32>, vector<1x128xf32>, vector<6x128xf32> -> vector<8x128xf32>
    %99 = arith.truncf %89 : vector<8x128xf32> to vector<8x128xbf16>
    %cst_64 = arith.constant dense<0.000000e+00> : vector<8x128xf32>
    %100 = tpu.matmul %99, %0, %cst_64 {dimension_numbers = #tpu.dot_dimension_numbers<[1], [0], [0], [1], [0, 0, 1, 1], [], []>} : vector<8x128xbf16>, vector<128x128xbf16>, vector<8x128xf32> -> vector<8x128xf32>
    %101 = arith.addf %98, %100 : vector<8x128xf32>
    %102 = math.tanh %101 : vector<8x128xf32>
    %103 = arith.truncf %102 : vector<8x128xf32> to vector<8x128xbf16>
    %c0_65 = arith.constant 0 : index
    %c0_66 = arith.constant 0 : index
    %104 = vector.load %arg4[%c0_65, %c0_66] : memref<128x128xbf16, #tpu.memory_space<vmem>>, vector<128x128xbf16>
    %cst_67 = arith.constant dense<0.000000e+00> : vector<8x128xf32>
    %105 = tpu.matmul %103, %104, %cst_67 {dimension_numbers = #tpu.dot_dimension_numbers<[1], [0], [0], [1], [0, 0, 1, 1], [], []>} : vector<8x128xbf16>, vector<128x128xbf16>, vector<8x128xf32> -> vector<8x128xf32>
    %c0_68 = arith.constant 0 : index
    %c0_69 = arith.constant 0 : index
    %106 = vector.load %arg5[%c0_68, %c0_69] : memref<1x128xf32, #tpu.memory_space<vmem>>, vector<1x128xf32>
    %107 = vector.broadcast %106 : vector<1x128xf32> to vector<8x128xf32>
    %108 = arith.addf %105, %107 : vector<8x128xf32>
    %c0_70 = arith.constant 0 : index
    %c0_71 = arith.constant 0 : index
    %109 = vector.load %arg6[%c0_70, %c0_71] : memref<8x128xf32, #tpu.memory_space<vmem>>, vector<8x128xf32>
    tpu.vector_store %arg6[%c0_70, %c0_71], %108 {strides = array<i32>} : memref<8x128xf32, #tpu.memory_space<vmem>>, vector<8x128xf32>,
    return
  }
  func.func @transform_0(%arg0: i32, %arg1: memref<2x8xi32, #tpu.memory_space<smem>>) -> (i32, i32, i32) {
    %c0_i32 = arith.constant 0 : i32
    %c0_i32_0 = arith.constant 0 : i32
    %c0_i32_1 = arith.constant 0 : i32
    %c0_i32_2 = arith.constant 0 : i32
    return %c0_i32, %c0_i32_0, %c0_i32_1 : i32, i32, i32
  }
  func.func @transform_1(%arg0: i32, %arg1: memref<2x8xi32, #tpu.memory_space<smem>>) -> (i32, i32) {
    %c0_i32 = arith.constant 0 : i32
    %c0_i32_0 = arith.constant 0 : i32
    %c0_i32_1 = arith.constant 0 : i32
    return %c0_i32, %c0_i32_0 : i32, i32
  }
  func.func @transform_2(%arg0: i32, %arg1: memref<2x8xi32, #tpu.memory_space<smem>>) -> (i32, i32) {
    %c0_i32 = arith.constant 0 : i32
    %c0_i32_0 = arith.constant 0 : i32
    %c0_i32_1 = arith.constant 0 : i32
    return %c0_i32, %c0_i32_0 : i32, i32
  }
  func.func @transform_3(%arg0: i32, %arg1: memref<2x8xi32, #tpu.memory_space<smem>>) -> (i32, i32) {
    %c0_i32 = arith.constant 0 : i32
    %c0_i32_0 = arith.constant 0 : i32
    %c0_i32_1 = arith.constant 0 : i32
    return %c0_i32, %c0_i32_0 : i32, i32
  }
  func.func @transform_4(%arg0: i32, %arg1: memref<2x8xi32, #tpu.memory_space<smem>>) -> (i32, i32) {
    %c0_i32 = arith.constant 0 : i32
    %c0_i32_0 = arith.constant 0 : i32
    %c0_i32_1 = arith.constant 0 : i32
    return %c0_i32, %c0_i32_0 : i32, i32
  }
}

</mosaic_0001>

<bundles_post_ra>
// kernel: torch_model_forward.1
= control target key start
LH: loop header
LB: loop body
LE: loop exit
PB: predicated region body
PF: predicated region fallthrough
CT: control target
= control target key end

     0   :  { %s1343_s0 = inlined_call_operand.hbm [shape: s32[2,8], index: 0, kind: input, shape index: {}]   ;;  %s1344_s1 = inlined_call_operand.hbm [shape: f32[30,1,128], index: 1, kind: input, shape index: {}]   ;;  %s1345_s2 = inlined_call_operand.hbm [shape: bf16[128,128], index: 2, kind: input, shape index: {}]   ;;  %s1346_s3 = inlined_call_operand.hbm [shape: bf16[128,128], index: 3, kind: input, shape index: {}]   ;;  %s1347_s4 = inlined_call_operand.vmem [shape: f32[1,128], index: 4, kind: input, shape index: {}]   ;;  %s1348_s5 = inlined_call_operand.vmem [shape: f32[8,128], index: 5, kind: output, shape index: {}]  }
   0x1   :  { %s993_s20 = scalar_lea.hbm %s1343_s0, 32 }
   0x2   :  { %p994_p0 = scmp.ne.s32.totalorder %s1343_s0, %s993_s20  ;;  %p997_p1 = scmp.lt.u32.totalorder %s993_s20, %s1343_s0 }
   0x4   :  { %p999_p2 = pnand %p997_p1, %p994_p0 }
   0x6   :  { %1002 = shalt.err (!%p999_p2)  }
   0x7   :  { %s1075_s25 = smov [#allocation3]  }
   0x8   :  { %11 = dma.hbm_to_smem %s1343_s0, 32, %s1075_s25, [#allocation2] }
   0x9   :  { %1069 = dma.done.wait [#allocation2], 32 }
   0xa   :  { %1070 = vsyncadd [#allocation2], 4294967264 }
   0xb   :  { %13 = sfence }
   0xc   :  { %14 = vsyncpa [#allocation5], 0 }
   0xd   :  { %15 = vsyncpa [#allocation7], 0  ;;  %s1076_s28 = smov [#allocation6]   ;;  %s1003_s7 = scalar_lea.hbm %s1345_s2, 1024 }
   0xe   :  { %s33_s29 = sshll.u32 %s1076_s28, 4  ;;  %p1004_p3 = scmp.ne.s32.totalorder %s1345_s2, %s1003_s7  ;;  %s34_s29 = int_to_ptr.vmem [resolvable:$true] %s33_s29 }
   0xf   :  { %p1007_p4 = scmp.lt.u32.totalorder %s1003_s7, %s1345_s2 }
  0x11   :  { %p1009_p5 = pnand %p1007_p4, %p1004_p3 }
  0x13   :  { %1012 = shalt.err (!%p1009_p5)
}
  0x14   :  { %s1013_s0 = scalar_lea.vmem %s34_s29, 1024  ;;  %p1018_p7 = scmp.lt.s32.totalorder %s34_s29, %s34_s29 }
  0x15   :  { %p1014_p6 = scmp.ne.s32.totalorder %s34_s29, %s1013_s0  ;;  %p1019_p8 = scmp.lt.s32.totalorder %s1013_s0, %s1013_s0 }
  0x17   :  { %p1020_p9 = por %p1019_p8, %p1018_p7 }
  0x19   :  { %p1021_p10 = pnand %p1020_p9, %p1014_p6 }
  0x1b   :  { %1024 = shalt.err (!%p1021_p10)
}
  0x1c   :  { %s1077_s12 = smov 64   ;;  %s1078_s13 = smov 4  }
  0x1d   :  { %39 = dma.hbm_to_vmem [thread:$0]  %s1345_s2, 1024, %s34_s29, [#allocation7], %s1077_s12, %s1077_s12, %s1078_s13  }
  0x1e   :  { %s1079_s16 = smov [#allocation4]   ;;  %s1025_s20 = scalar_lea.hbm %s1344_s1, 480 }
  0x1f   :  { %s21_s17 = sshll.u32 %s1079_s16, 4  ;;  %p1026_p11 = scmp.ne.s32.totalorder %s1344_s1, %s1025_s20  ;;  %s22_s17 = int_to_ptr.vmem [resolvable:$true] %s21_s17 }
  0x20   :  { %p1029_p12 = scmp.lt.u32.totalorder %s1025_s20, %s1344_s1 }
  0x22   :  { %p1031_p13 = pnand %p1029_p12, %p1026_p11 }
  0x24   :  { %1034 = shalt.err (!%p1031_p13)
}
  0x25   :  { %s1035_s25 = scalar_lea.vmem %s22_s17, 480  ;;  %p1040_p1 = scmp.lt.s32.totalorder %s22_s17, %s22_s17 }
  0x26   :  { %p1036_p0 = scmp.ne.s32.totalorder %s22_s17, %s1035_s25  ;;  %p1041_p2 = scmp.lt.s32.totalorder %s1035_s25, %s1035_s25 }
  0x28   :  { %p1042_p3 = por %p1041_p2, %p1040_p1 }
  0x2a   :  { %p1043_p4 = pnand %p1042_p3, %p1036_p0 }
  0x2c   :  { %1046 = shalt.err (!%p1043_p4)
}
  0x2d   :  { %s1080_s2 = smov 16   ;;  %s1081_s26 = smov 1  }
  0x2e   :  { %27 = dma.hbm_to_vmem [thread:$0]  %s1344_s1, 480, %s22_s17, [#allocation5], %s1080_s2, %s1080_s2, %s1081_s26  }
  0x2f   :  { %s1082_s29 = smov [#allocation8]   ;;  %s1047_s8 = scalar_lea.hbm %s1346_s3, 1024 }
  0x30   :  { %s45_s30 = sshll.u32 %s1082_s29, 4  ;;  %p1048_p5 = scmp.ne.s32.totalorder %s1346_s3, %s1047_s8  ;;  %s46_s30 = int_to_ptr.vmem [resolvable:$true] %s45_s30 }
  0x31   :  { %p1051_p6 = scmp.lt.u32.totalorder %s1047_s8, %s1346_s3 }
  0x33   :  { %p1053_p7 = pnand %p1051_p6, %p1048_p5 }
  0x35   :  { %1056 = shalt.err (!%p1053_p7)
}
  0x36   :  { %s1057_s14 = scalar_lea.vmem %s46_s30, 1024  ;;  %p1062_p9 = scmp.lt.s32.totalorder %s46_s30, %s46_s30 }
  0x37   :  { %p1058_p8 = scmp.ne.s32.totalorder %s46_s30, %s1057_s14  ;;  %p1063_p10 = scmp.lt.s32.totalorder %s1057_s14, %s1057_s14 }
  0x39   :  { %p1064_p11 = por %p1063_p10, %p1062_p9 }
  0x3b   :  { %p1065_p12 = pnand %p1064_p11, %p1058_p8 }
  0x3d   :  { %1068 = shalt.err (!%p1065_p12)
}
  0x3e   :  { %51 = dma.hbm_to_vmem [thread:$0]  %s1346_s3, 1024, %s46_s30, [#allocation7], %s1077_s12, %s1077_s12, %s1078_s13  }
  0x3f   :  { %1071 = dma.done.wait [#allocation5], 480  }
  0x40   :  { %1072 = vsyncadd [#allocation5], 4294966816 }
  0x41   :  { %1073 = dma.done.wait [#allocation7], 2048  }
  0x42   :  { %1074 = vsyncadd [#allocation7], 4294965248  ;;  %v1083_v0 = vmov 0.0   ;;  %vm1084_vm0 = vmmov 0   ;;  %s80_s16 = sld [smem:[#allocation3]]  ;;  %v1175_v1 = vld [vmem:[#allocation6] sm:$0xff]  }
  0x43   :  { %791 = vmatprep.subr.bf16.mxu0 %v1083_v0  ;;  %807 = vmatprep.mubr.msk.bf16.mxu0 %vm1084_vm0, %v1083_v0  ;;  %s679_s17 = sld [smem:[#allocation3 + $0x80]]  ;;  %v1178_v2 = vld [vmem:[#allocation6 + $0x8] sm:$0xff]   ;;  %v1184_v3 = vld [vmem:[#allocation6 + $0x10] sm:$0xff]   ;;  %vm92_vm1 = vcmask 1040384   ;;  %vm94_vm2 = vcmask 1041408   ;;  %v1191_v7 = vld [vmem:[#allocation6 + $0x18] sm:$0xff]  }
  0x44   :  { %811 = vmatprep.subr.bf16.mxu1 %v1083_v0  ;;  %827 = vmatprep.mubr.msk.bf16.mxu1 %vm1084_vm0, %v1083_v0  ;;  %v1197_v9 = vld [vmem:[#allocation6 + $0x20] sm:$0xff]   ;;  %v1204_v10 = vld [vmem:[#allocation6 + $0x28] sm:$0xff]   ;;  %v1210_v11 = vld [vmem:[#allocation6 + $0x30] sm:$0xff]   ;;  %s681_s13 = sld [smem:[#allocation3 + $0x1]]  ;;  %s692_s21 = sld [smem:[#allocation3 + $0x2]] }
  0x45   :  { %792 = vmatpush3.bf16.msra.mxu0 %v1175_v1  ;;  %812 = vmatpush3.bf16.msra.mxu1 %v1175_v1  ;;  %v1216_v13 = vld [vmem:[#allocation6 + $0x38] sm:$0xff]   ;;  %s682_s18 = sld [smem:[#allocation3 + $0x81]]  ;;  %s693_s22 = sld [smem:[#allocation3 + $0x82]] }
  0x46   :  { %793 = vmatprep.subr.bf16.mxu0 %v1083_v0  ;;  %813 = vmatprep.subr.bf16.mxu1 %v1083_v0  ;;  %s695_s25 = sld [smem:[#allocation3 + $0x3]]  ;;  %s698_s28 = sld [smem:[#allocation3 + $0x4]] }
  0x47   :  { %s696_s2 = sld [smem:[#allocation3 + $0x83]]  ;;  %s699_s29 = sld [smem:[#allocation3 + $0x84]] }
  0x48   :  { %s81_s3 = scalar_lea.vmem [#allocation4], %s80_s16  ;;  %s701_s7 = sld [smem:[#allocation3 + $0x5]] }
  0x49   :  { %794 = vmatpush3.bf16.msra.mxu0 %v1178_v2  ;;  %814 = vmatpush3.bf16.msra.mxu1 %v1178_v2  ;;  %v82_v4 = vld [vmem:[%s81_s3] sm:$0x1]  ;;  %s84_s12 = scalar_lea.vmem [#allocation4], %s679_s17  ;;  %s702_s8 = sld [smem:[#allocation3 + $0x85]] }
  0x4a   :  { %795 = vmatprep.subr.bf16.mxu0 %v1083_v0  ;;  %815 = vmatprep.subr.bf16.mxu1 %v1083_v0  ;;  %v680_v5 = vld [vmem:[%s84_s12] ss:$0 sm:$0xff]  ;;  %s98_s19 = scalar_lea.vmem [#allocation4], %s681_s13  ;;  %s203_s23 = scalar_lea.vmem [#allocation4], %s692_s21 }
  0x4b   :  { %v93_v6 = vsel %vm92_vm1, %v82_v4, %v680_v5  ;;  %v99_v15 = vld [vmem:[%s98_s19] sm:$0x1]  ;;  %s101_s20 = scalar_lea.vmem [#allocation4], %s682_s18  ;;  %s206_s24 = scalar_lea.vmem [#allocation4], %s693_s22 }
  0x4c   :  { %v95_v8 = vsel %vm94_vm2, %v93_v6, 0.0  ;;  %v683_v16 = vld [vmem:[%s101_s20] ss:$0 sm:$0xff]  ;;  %s260_s26 = scalar_lea.vmem [#allocation4], %s695_s25  ;;  %s317_s30 = scalar_lea.vmem [#allocation4], %s698_s28 }
  0x4d   :  { %796 = vmatpush3.bf16.msra.mxu0 %v1184_v3  ;;  %816 = vmatpush3.bf16.msra.mxu1 %v1184_v3  ;;  %977 = vtanh.f32 %v95_v8  ;;  %v109_v17 = vsel %vm92_vm1, %v99_v15, %v683_v16  ;;  %v204_v26 = vld [vmem:[%s203_s23] sm:$0x1]  ;;  %s263_s27 = scalar_lea.vmem [#allocation4], %s696_s2  ;;  %s320_s6 = scalar_lea.vmem [#allocation4], %s699_s29  ;;  %v970_v8 = vld [vmem:[#allocation8 + $0x8] sm:$0xff]  }
  0x4e   :  { %797 = vmatprep.subr.bf16.mxu0 %v1083_v0  ;;  %817 = vmatprep.subr.bf16.mxu1 %v1083_v0  ;;  %v110_v18 = vsel %vm94_vm2, %v109_v17, 0.0  ;;  %v694_v27 = vld [vmem:[%s206_s24] ss:$0 sm:$0xff]  ;;  %s374_s9 = scalar_lea.vmem [#allocation4], %s701_s7  ;;  %s704_s11 = sld [smem:[#allocation3 + $0x6]] }
  0x4f   :  { %v214_v28 = vsel %vm92_vm1, %v204_v26, %v694_v27  ;;  %v261_v37 = vld [vmem:[%s260_s26] sm:$0x1]  ;;  %s377_s10 = scalar_lea.vmem [#allocation4], %s702_s8  ;;  %s705_s0 = sld [smem:[#allocation3 + $0x86]] }
  0x50   :  { %v215_v29 = vsel %vm94_vm2, %v214_v28, 0.0  ;;  %v697_v38 = vld [vmem:[%s263_s27] ss:$0 sm:$0xff]  ;;  %s707_s15 = sld [smem:[#allocation3 + $0x7]] }
  0x51   :  { %798 = vmatpush3.bf16.msra.mxu0 %v1191_v7  ;;  %818 = vmatpush3.bf16.msra.mxu1 %v1191_v7  ;;  %v271_v39 = vsel %vm92_vm1, %v261_v37, %v697_v38  ;;  %v318_v48 = vld [vmem:[%s317_s30] sm:$0x1]  ;;  %s708_s16 = sld [smem:[#allocation3 + $0x87]] }
  0x52   :  { %799 = vmatprep.subr.bf16.mxu0 %v1083_v0  ;;  %819 = vmatprep.subr.bf16.mxu1 %v1083_v0  ;;  %v272_v40 = vsel %vm94_vm2, %v271_v39, 0.0  ;;  %v700_v49 = vld [vmem:[%s320_s6] ss:$0 sm:$0xff] }
  0x53   :  { %v328_v50 = vsel %vm92_vm1, %v318_v48, %v700_v49  ;;  %v375_v59 = vld [vmem:[%s374_s9] sm:$0x1] }
  0x54   :  { %v329_v51 = vsel %vm94_vm2, %v328_v50, 0.0  ;;  %v703_v60 = vld [vmem:[%s377_s10] ss:$0 sm:$0xff]  ;;  %s431_s14 = scalar_lea.vmem [#allocation4], %s704_s11 }
  0x55   :  { %800 = vmatpush3.bf16.msra.mxu0 %v1197_v9  ;;  %820 = vmatpush3.bf16.msra.mxu1 %v1197_v9  ;;  %v385_v61 = vsel %vm92_vm1, %v375_v59, %v703_v60  ;;  %s434_s1 = scalar_lea.vmem [#allocation4], %s705_s0 }
  0x56   :  { %801 = vmatprep.subr.bf16.mxu0 %v1083_v0  ;;  %821 = vmatprep.subr.bf16.mxu1 %v1083_v0  ;;  %v386_v62 = vsel %vm94_vm2, %v385_v61, 0.0  ;;  %s488_s17 = scalar_lea.vmem [#allocation4], %s707_s15 }
  0x57   :  { %v978_v12 = vpop.eup %977  ;;  %v489_v26 = vld [vmem:[%s488_s17] sm:$0x1]  ;;  %s491_s3 = scalar_lea.vmem [#allocation4], %s708_s16 }
  0x58   :  { %v111_v14 = vpack.c.bf16 %v978_v12, %v978_v12  ;;  %v706_v12 = vld [vmem:[%s434_s1] ss:$0 sm:$0xff] }
  0x59   :  { %802 = vmatpush3.bf16.msra.mxu0 %v1204_v10  ;;  %822 = vmatpush3.bf16.msra.mxu1 %v1204_v10  ;;  %v709_v27 = vld [vmem:[%s491_s3] ss:$0 sm:$0xff] }
  0x5a   :  { %803 = vmatprep.subr.bf16.mxu0 %v1083_v0  ;;  %823 = vmatprep.subr.bf16.mxu1 %v1083_v0  ;;  %v499_v28 = vsel %vm92_vm1, %v489_v26, %v709_v27 }
  0x5d   :  { %804 = vmatpush3.bf16.msra.mxu0 %v1210_v11  ;;  %824 = vmatpush3.bf16.msra.mxu1 %v1210_v11 }
  0x5e   :  { %805 = vmatprep.subr.bf16.mxu0 %v1083_v0  ;;  %825 = vmatprep.subr.bf16.mxu1 %v1083_v0 }
  0x61   :  { %806 = vmatpush3.bf16.msra.mxu0 %v1216_v13  ;;  %826 = vmatpush3.bf16.msra.mxu1 %v1216_v13 }
  0x62   :  { %831 = vmatprep.subr.bf16.mxu0 %v1083_v0  ;;  %851 = vmatprep.subr.bf16.mxu1 %v1083_v0 }
  0x64   :  { %808 = vmatmul.mubr.bf16.vlgmr.msra.gmra.mrb[0].mxu0 %v111_v14 }
  0x65   :  { %832 = vmatpush3.bf16.msra.mxu0 %v1175_v1  ;;  %847 = vmatprep.mubr.msk.bf16.mxu0 %vm1084_vm0, %v1083_v0 }
  0x66   :  { %833 = vmatprep.subr.bf16.mxu0 %v1083_v0 }
  0x69   :  { %834 = vmatpush3.bf16.msra.mxu0 %v1178_v2 }
  0x6a   :  { %835 = vmatprep.subr.bf16.mxu0 %v1083_v0 }
  0x6d   :  { %836 = vmatpush3.bf16.msra.mxu0 %v1184_v3 }
  0x6e   :  { %837 = vmatprep.subr.bf16.mxu0 %v1083_v0 }
  0x71   :  { %838 = vmatpush3.bf16.msra.mxu0 %v1191_v7 }
  0x72   :  { %839 = vmatprep.subr.bf16.mxu0 %v1083_v0 }
  0x75   :  { %840 = vmatpush3.bf16.msra.mxu0 %v1197_v9 }
  0x76   :  { %841 = vmatprep.subr.bf16.mxu0 %v1083_v0 }
  0x79   :  { %842 = vmatpush3.bf16.msra.mxu0 %v1204_v10 }
  0x7a   :  { %843 = vmatprep.subr.bf16.mxu0 %v1083_v0 }
  0x7d   :  { %844 = vmatpush3.bf16.msra.mxu0 %v1210_v11 }
  0x7e   :  { %845 = vmatprep.subr.bf16.mxu0 %v1083_v0 }
  0x81   :  { %846 = vmatpush3.bf16.msra.mxu0 %v1216_v13 }
  0x82   :  { %871 = vmatprep.subr.bf16.mxu0 %v1083_v0 }
 0x137   :  { %v194_v19 = vpop.f32.mrb[0].mxu0 }
 0x138   :  { %v200_v20 = vadd.f32 %v194_v19, %v110_v18  ;;  %v809_v21 = vpop.f32.mrb[1].mxu0 }
 0x139   :  { %v197_v22 = vpop.f32.mrb[2].mxu0 }
 0x13a   :  { %979 = vtanh.f32 %v200_v20  ;;  %v810_v23 = vpop.f32.mrb[3].mxu0  ;;  %v973_v22 = vld [vmem:[#allocation8 + $0x20] sm:$0xff]  }
 0x13b   :  { %v974_v23 = vld [vmem:[#allocation8 + $0x28] sm:$0xff]  }
 0x144   :  { %v980_v24 = vpop.eup %979 }
 0x145   :  { %v216_v25 = vpack.c.bf16 %v980_v24, %v980_v24  ;;  %v975_v24 = vld [vmem:[#allocation8 + $0x30] sm:$0xff]  }
 0x147   :  { %828 = vmatmul.mubr.bf16.vlgmr.msra.gmra.mrb[0].mxu1 %v216_v25  ;;  %v976_v25 = vld [vmem:[#allocation8 + $0x38] sm:$0xff]  }
 0x148   :  { %852 = vmatpush3.bf16.msra.mxu1 %v1175_v1  ;;  %867 = vmatprep.mubr.msk.bf16.mxu1 %vm1084_vm0, %v1083_v0 }
 0x149   :  { %853 = vmatprep.subr.bf16.mxu1 %v1083_v0 }
 0x14c   :  { %854 = vmatpush3.bf16.msra.mxu1 %v1178_v2 }
 0x14d   :  { %855 = vmatprep.subr.bf16.mxu1 %v1083_v0 }
 0x150   :  { %856 = vmatpush3.bf16.msra.mxu1 %v1184_v3 }
 0x151   :  { %857 = vmatprep.subr.bf16.mxu1 %v1083_v0 }
 0x154   :  { %858 = vmatpush3.bf16.msra.mxu1 %v1191_v7 }
 0x155   :  { %859 = vmatprep.subr.bf16.mxu1 %v1083_v0 }
 0x158   :  { %860 = vmatpush3.bf16.msra.mxu1 %v1197_v9 }
 0x159   :  { %861 = vmatprep.subr.bf16.mxu1 %v1083_v0 }
 0x15c   :  { %862 = vmatpush3.bf16.msra.mxu1 %v1204_v10 }
 0x15d   :  { %863 = vmatprep.subr.bf16.mxu1 %v1083_v0 }
 0x160   :  { %864 = vmatpush3.bf16.msra.mxu1 %v1210_v11 }
 0x161   :  { %865 = vmatprep.subr.bf16.mxu1 %v1083_v0 }
 0x164   :  { %866 = vmatpush3.bf16.msra.mxu1 %v1216_v13 }
 0x165   :  { %891 = vmatprep.subr.bf16.mxu1 %v1083_v0 }
 0x21a   :  { %v251_v30 = vpop.f32.mrb[0].mxu1 }
 0x21b   :  { %v257_v31 = vadd.f32 %v251_v30, %v215_v29  ;;  %v829_v32 = vpop.f32.mrb[1].mxu1  ;;  %v500_v29 = vsel %vm94_vm2, %v499_v28, 0.0 }
 0x21c   :  { %v254_v33 = vpop.f32.mrb[2].mxu1 }
 0x21d   :  { %981 = vtanh.f32 %v257_v31  ;;  %v830_v34 = vpop.f32.mrb[3].mxu1 }
 0x227   :  { %v982_v35 = vpop.eup %981 }
 0x228   :  { %v273_v36 = vpack.c.bf16 %v982_v35, %v982_v35 }
 0x22a   :  { %848 = vmatmul.mubr.bf16.vlgmr.msra.gmra.mrb[4].mxu0 %v273_v36  ;;  %v710_v36 = vld [vmem:[%s1347_s4] ss:$0 sm:$0xff] }
 0x22b   :  { %872 = vmatpush3.bf16.msra.mxu0 %v1175_v1  ;;  %887 = vmatprep.mubr.msk.bf16.mxu0 %vm1084_vm0, %v1083_v0 }
 0x22c   :  { %873 = vmatprep.subr.bf16.mxu0 %v1083_v0 }
 0x22f   :  { %874 = vmatpush3.bf16.msra.mxu0 %v1178_v2 }
 0x230   :  { %875 = vmatprep.subr.bf16.mxu0 %v1083_v0 }
 0x233   :  { %876 = vmatpush3.bf16.msra.mxu0 %v1184_v3 }
 0x234   :  { %877 = vmatprep.subr.bf16.mxu0 %v1083_v0 }
 0x237   :  { %878 = vmatpush3.bf16.msra.mxu0 %v1191_v7 }
 0x238   :  { %879 = vmatprep.subr.bf16.mxu0 %v1083_v0 }
 0x23b   :  { %880 = vmatpush3.bf16.msra.mxu0 %v1197_v9 }
 0x23c   :  { %881 = vmatprep.subr.bf16.mxu0 %v1083_v0 }
 0x23f   :  { %882 = vmatpush3.bf16.msra.mxu0 %v1204_v10 }
 0x240   :  { %883 = vmatprep.subr.bf16.mxu0 %v1083_v0 }
 0x243   :  { %884 = vmatpush3.bf16.msra.mxu0 %v1210_v11 }
 0x244   :  { %885 = vmatprep.subr.bf16.mxu0 %v1083_v0 }
 0x247   :  { %886 = vmatpush3.bf16.msra.mxu0 %v1216_v13 }
 0x248   :  { %911 = vmatprep.subr.bf16.mxu0 %v1083_v0 }
 0x2fd   :  { %v308_v41 = vpop.f32.mrb[4].mxu0 }
 0x2fe   :  { %v314_v42 = vadd.f32 %v308_v41, %v272_v40  ;;  %v849_v43 = vpop.f32.mrb[5].mxu0 }
 0x2ff   :  { %v311_v44 = vpop.f32.mrb[6].mxu0 }
 0x300   :  { %983 = vtanh.f32 %v314_v42  ;;  %v850_v45 = vpop.f32.mrb[7].mxu0 }
 0x30a   :  { %v984_v46 = vpop.eup %983 }
 0x30b   :  { %v330_v47 = vpack.c.bf16 %v984_v46, %v984_v46 }
 0x30d   :  { %868 = vmatmul.mubr.bf16.vlgmr.msra.gmra.mrb[4].mxu1 %v330_v47 }
 0x30e   :  { %892 = vmatpush3.bf16.msra.mxu1 %v1175_v1  ;;  %907 = vmatprep.mubr.msk.bf16.mxu1 %vm1084_vm0, %v1083_v0 }
 0x30f   :  { %893 = vmatprep.subr.bf16.mxu1 %v1083_v0 }
 0x312   :  { %894 = vmatpush3.bf16.msra.mxu1 %v1178_v2 }
 0x313   :  { %895 = vmatprep.subr.bf16.mxu1 %v1083_v0 }
 0x316   :  { %896 = vmatpush3.bf16.msra.mxu1 %v1184_v3 }
 0x317   :  { %897 = vmatprep.subr.bf16.mxu1 %v1083_v0 }
 0x31a   :  { %898 = vmatpush3.bf16.msra.mxu1 %v1191_v7 }
 0x31b   :  { %899 = vmatprep.subr.bf16.mxu1 %v1083_v0 }
 0x31e   :  { %900 = vmatpush3.bf16.msra.mxu1 %v1197_v9 }
 0x31f   :  { %901 = vmatprep.subr.bf16.mxu1 %v1083_v0 }
 0x322   :  { %902 = vmatpush3.bf16.msra.mxu1 %v1204_v10 }
 0x323   :  { %903 = vmatprep.subr.bf16.mxu1 %v1083_v0 }
 0x326   :  { %904 = vmatpush3.bf16.msra.mxu1 %v1210_v11 }
 0x327   :  { %905 = vmatprep.subr.bf16.mxu1 %v1083_v0 }
 0x32a   :  { %906 = vmatpush3.bf16.msra.mxu1 %v1216_v13 }
 0x32b   :  { %931 = vmatprep.subr.bf16.mxu1 %v1083_v0 }
 0x3e0   :  { %v365_v52 = vpop.f32.mrb[4].mxu1 }
 0x3e1   :  { %v371_v53 = vadd.f32 %v365_v52, %v329_v51  ;;  %v869_v54 = vpop.f32.mrb[5].mxu1 }
 0x3e2   :  { %v368_v55 = vpop.f32.mrb[6].mxu1 }
 0x3e3   :  { %985 = vtanh.f32 %v371_v53  ;;  %v870_v56 = vpop.f32.mrb[7].mxu1 }
 0x3ed   :  { %v986_v57 = vpop.eup %985 }
 0x3ee   :  { %v387_v58 = vpack.c.bf16 %v986_v57, %v986_v57 }
 0x3f0   :  { %888 = vmatmul.mubr.bf16.vlgmr.msra.gmra.mrb[8].mxu0 %v387_v58 }
 0x3f1   :  { %912 = vmatpush3.bf16.msra.mxu0 %v1175_v1  ;;  %927 = vmatprep.mubr.msk.bf16.mxu0 %vm1084_vm0, %v1083_v0 }
 0x3f2   :  { %913 = vmatprep.subr.bf16.mxu0 %v1083_v0 }
 0x3f5   :  { %914 = vmatpush3.bf16.msra.mxu0 %v1178_v2 }
 0x3f6   :  { %915 = vmatprep.subr.bf16.mxu0 %v1083_v0 }
 0x3f9   :  { %916 = vmatpush3.bf16.msra.mxu0 %v1184_v3 }
 0x3fa   :  { %917 = vmatprep.subr.bf16.mxu0 %v1083_v0 }
 0x3fd   :  { %918 = vmatpush3.bf16.msra.mxu0 %v1191_v7  ;;  %v969_v7 = vld [vmem:[#allocation8] sm:$0xff]  }
 0x3fe   :  { %919 = vmatprep.subr.bf16.mxu0 %v1083_v0 }
 0x401   :  { %920 = vmatpush3.bf16.msra.mxu0 %v1197_v9  ;;  %v971_v9 = vld [vmem:[#allocation8 + $0x10] sm:$0xff]  }
 0x402   :  { %921 = vmatprep.subr.bf16.mxu0 %v1083_v0 }
 0x405   :  { %922 = vmatpush3.bf16.msra.mxu0 %v1204_v10  ;;  %v972_v10 = vld [vmem:[#allocation8 + $0x18] sm:$0xff]  }
 0x406   :  { %923 = vmatprep.subr.bf16.mxu0 %v1083_v0 }
 0x409   :  { %924 = vmatpush3.bf16.msra.mxu0 %v1210_v11  ;;  %v432_v11 = vld [vmem:[%s431_s14] sm:$0x1] }
 0x40a   :  { %925 = vmatprep.subr.bf16.mxu0 %v1083_v0 }
 0x40d   :  { %926 = vmatpush3.bf16.msra.mxu0 %v1216_v13  ;;  %v442_v13 = vsel %vm92_vm1, %v432_v11, %v706_v12 }
 0x40e   :  { %v443_v14 = vsel %vm94_vm2, %v442_v13, 0.0 }
 0x4c3   :  { %v422_v63 = vpop.f32.mrb[8].mxu0 }
 0x4c4   :  { %v428_v1 = vadd.f32 %v422_v63, %v386_v62  ;;  %v889_v2 = vpop.f32.mrb[9].mxu0 }
 0x4c5   :  { %v425_v3 = vpop.f32.mrb[10].mxu0 }
 0x4c6   :  { %987 = vtanh.f32 %v428_v1  ;;  %v890_v4 = vpop.f32.mrb[11].mxu0 }
 0x4d0   :  { %v988_v5 = vpop.eup %987 }
 0x4d1   :  { %v444_v6 = vpack.c.bf16 %v988_v5, %v988_v5 }
 0x4d3   :  { %908 = vmatmul.mubr.bf16.vlgmr.msra.gmra.mrb[8].mxu1 %v444_v6 }
 0x4d4   :  { %947 = vmatprep.mubr.msk.bf16.mxu1 %vm1084_vm0, %v1083_v0  ;;  %932 = vmatpush3.bf16.msra.mxu1 %v969_v7 }
 0x4d5   :  { %933 = vmatprep.subr.bf16.mxu1 %v1083_v0 }
 0x4d8   :  { %934 = vmatpush3.bf16.msra.mxu1 %v970_v8 }
 0x4d9   :  { %935 = vmatprep.subr.bf16.mxu1 %v1083_v0 }
 0x4dc   :  { %936 = vmatpush3.bf16.msra.mxu1 %v971_v9 }
 0x4dd   :  { %937 = vmatprep.subr.bf16.mxu1 %v1083_v0 }
 0x4e0   :  { %938 = vmatpush3.bf16.msra.mxu1 %v972_v10 }
 0x4e1   :  { %939 = vmatprep.subr.bf16.mxu1 %v1083_v0 }
 0x4e4   :  { %940 = vmatpush3.bf16.msra.mxu1 %v973_v22 }
 0x4e5   :  { %941 = vmatprep.subr.bf16.mxu1 %v1083_v0 }
 0x4e8   :  { %942 = vmatpush3.bf16.msra.mxu1 %v974_v23 }
 0x4e9   :  { %943 = vmatprep.subr.bf16.mxu1 %v1083_v0 }
 0x4ec   :  { %944 = vmatpush3.bf16.msra.mxu1 %v975_v24 }
 0x4ed   :  { %945 = vmatprep.subr.bf16.mxu1 %v1083_v0 }
 0x4f0   :  { %946 = vmatpush3.bf16.msra.mxu1 %v976_v25 }
 0x5a6   :  { %v479_v15 = vpop.f32.mrb[8].mxu1 }
 0x5a7   :  { %v485_v16 = vadd.f32 %v479_v15, %v443_v14  ;;  %v909_v17 = vpop.f32.mrb[9].mxu1 }
 0x5a8   :  { %v482_v18 = vpop.f32.mrb[10].mxu1 }
 0x5a9   :  { %989 = vtanh.f32 %v485_v16  ;;  %v910_v19 = vpop.f32.mrb[11].mxu1 }
 0x5b3   :  { %v990_v20 = vpop.eup %989 }
 0x5b4   :  { %v501_v21 = vpack.c.bf16 %v990_v20, %v990_v20 }
 0x5b6   :  { %928 = vmatmul.mubr.bf16.vlgmr.msra.gmra.mrb[12].mxu0 %v501_v21 }
 0x689   :  { %v536_v30 = vpop.f32.mrb[12].mxu0 }
 0x68a   :  { %v542_v31 = vadd.f32 %v536_v30, %v500_v29  ;;  %v929_v32 = vpop.f32.mrb[13].mxu0 }
 0x68b   :  { %v539_v33 = vpop.f32.mrb[14].mxu0 }
 0x68c   :  { %991 = vtanh.f32 %v542_v31  ;;  %v930_v34 = vpop.f32.mrb[15].mxu0 }
 0x696   :  { %v992_v35 = vpop.eup %991 }
 0x697   :  { %v544_v0 = vpack.c.bf16 %v992_v35, %v992_v35 }
 0x699   :  { %948 = vmatmul.mubr.bf16.vlgmr.msra.gmra.mrb[12].mxu1 %v544_v0 }
 0x76c   :  { %v650_v37 = vpop.f32.mrb[12].mxu1 }
 0x76d   :  { %v651_v38 = vadd.f32 %v710_v36, %v650_v37  ;;  %v949_v39 = vpop.f32.mrb[13].mxu1 }
 0x76e   :  { %v653_v40 = vpop.f32.mrb[14].mxu1 }
 0x76f   :  { %656 = vst [vmem:[%s1348_s5] sm:$0xff] %v651_v38  ;;  %v950_v41 = vpop.f32.mrb[15].mxu1 }
 0x770   :  { %661 = vsyncpa [#allocation5], 1 }
 0x771   :  { %662 = vsyncpa [#allocation7], 1 }

</bundles_post_ra>
